<compile_context>
chip_gen: v7x
topology: tpu7x:2x2x1
jax: 0.10.0
libtpu: 0.0.40
codegen_flags: <defaults>
</compile_context>

<pallas_src>
import functools

import jax
import jax.numpy as jnp
from jax.experimental import pallas as pl
from jax.experimental.pallas import tpu as pltpu


def _round_up(v, m):
    return (v + m - 1) // m * m


# ----------------------------------------------------------------------------
# Pallas kernel: weighted sum of expert FFN outputs (one token tile at a time)
# ----------------------------------------------------------------------------
def moe_ffn_kernel(gamma_ref, x_ref, w1_ref, b1_ref, w2_ref, b2_ref, out_ref):
    # grid = (token_tiles, E); expert (reduction) axis is innermost.
    e = pl.program_id(1)

    @pl.when(e == 0)
    def _():
        out_ref[...] = jnp.zeros_like(out_ref)

    # First linear + ReLU (bf16 MXU matmul, f32 accumulation).
    h = jnp.dot(x_ref[...], w1_ref[...], preferred_element_type=jnp.float32)
    h = jnp.maximum(h + b1_ref[e], 0.0)            # b1_ref[e]: (1, Fp) broadcast
    # Second linear (cast back to bf16 so the MXU stays bf16-native).
    y = jnp.dot(h.astype(w2_ref.dtype), w2_ref[...],
                preferred_element_type=jnp.float32)
    y = y + b2_ref[e]                               # b2_ref[e]: (1, Hp) broadcast
    # Scale by this expert's (temperature-softmaxed) gamma and accumulate (f32).
    out_ref[...] += y * gamma_ref[e]


@functools.partial(jax.jit)
def moe_weighted_sum(x2d, gamma_scaled, w1, b1, w2, b2):
    """x2d:[N,H] f32, w1:[E,H,F], b1:[E,F], w2:[E,F,H], b2:[E,H] (f32). -> [N,H] f32."""
    N, H = x2d.shape
    E, _, Fd = w1.shape

    # Lane-dense padding: last dims -> multiples of 128, token dim -> tile multiple.
    Hp = _round_up(H, 128)
    Fp = _round_up(Fd, 128)
    TN = min(_round_up(N, 8), 512)                  # token tile (sublane multiple)
    Np = _round_up(N, TN)
    n_tiles = Np // TN

    xp = jnp.zeros((Np, Hp), jnp.bfloat16).at[:N, :H].set(x2d.astype(jnp.bfloat16))
    w1p = jnp.zeros((E, Hp, Fp), jnp.bfloat16).at[:, :H, :Fd].set(w1.astype(jnp.bfloat16))
    w2p = jnp.zeros((E, Fp, Hp), jnp.bfloat16).at[:, :Fd, :H].set(w2.astype(jnp.bfloat16))
    b1p = jnp.zeros((E, 1, Fp), jnp.float32).at[:, 0, :Fd].set(b1)
    b2p = jnp.zeros((E, 1, Hp), jnp.float32).at[:, 0, :H].set(b2)

    # VMEM budget (explicit so tiles stay double-buffered on v7x's 64 MiB VMEM).
    est = (2 * TN * Hp * 2            # x double-buffer (bf16)
           + 2 * TN * Hp * 4          # out accumulator (f32, double-buffered)
           + 2 * 2 * Hp * Fp * 2      # W1 + W2 double-buffers (bf16)
           + E * (Fp + Hp) * 4        # resident biases (f32)
           + 2 * TN * Fp * 4)         # hidden activation + slack
    vmem_limit = int(min(max(2 * est, 16 * 1024 * 1024), 48 * 1024 * 1024))
    # TODO(synk): for very large H/F (e.g. 4096x16384) add an inner F-tiling grid
    # axis and/or pipeline_mode=pl.Buffered(3) on the weight specs.

    out = pl.pallas_call(
        moe_ffn_kernel,
        out_shape=jax.ShapeDtypeStruct((Np, Hp), jnp.float32),
        grid_spec=pltpu.PrefetchScalarGridSpec(
            num_scalar_prefetch=1,                   # gamma_scaled lands in SMEM
            grid=(n_tiles, E),                       # reduction (expert) axis last
            in_specs=[
                pl.BlockSpec((TN, Hp), lambda i, e, g: (i, 0)),                 # x tile
                pl.BlockSpec((pl.Squeezed(), Hp, Fp), lambda i, e, g: (e, 0, 0)),  # W1[e]
                pl.BlockSpec((E, 1, Fp), lambda i, e, g: (0, 0, 0)),            # all b1 (resident)
                pl.BlockSpec((pl.Squeezed(), Fp, Hp), lambda i, e, g: (e, 0, 0)),  # W2[e]
                pl.BlockSpec((E, 1, Hp), lambda i, e, g: (0, 0, 0)),            # all b2 (resident)
            ],
            out_specs=pl.BlockSpec((TN, Hp), lambda i, e, g: (i, 0)),           # accumulator
        ),
        compiler_params=pltpu.CompilerParams(
            dimension_semantics=("parallel", "arbitrary"),
            vmem_limit_bytes=vmem_limit),
    )(gamma_scaled, xp, w1p, b1p, w2p, b2p)

    return out[:N, :H]


# ----------------------------------------------------------------------------
# Penalty terms (exact PyTorch semantics)
# ----------------------------------------------------------------------------
def entropy_regularization(p):
    return -jnp.sum(p * jnp.log(p + 1e-08))


def kl_divergence(p, q, epsilon=1e-08):
    p = jnp.clip(p, epsilon)
    q = jnp.clip(q, epsilon)
    return jnp.sum(p * jnp.log(p / q))


def temperature_scaled_softmax(gamma_vec, temperature=0.7):
    return jax.nn.softmax(gamma_vec / temperature, axis=0)


def update_gamma_values(gamma_values, expert_losses, scaling_factor=0.1):
    # host-side bookkeeping, mirrors the PyTorch dict update
    updated = {}
    total_loss = sum(expert_losses.values())
    for expert, loss in expert_losses.items():
        updated[expert] = gamma_values[expert] * (total_loss / (loss + 1e-08)) * scaling_factor
    s = sum(updated.values())
    return {k: v / s for k, v in updated.items()}


# ----------------------------------------------------------------------------
# Router module (forward pass)
# ----------------------------------------------------------------------------
class MoCaERouterWithPenalties:
    def __init__(self, expert_params, gamma_values, previous_gamma_values=None,
                 temperature=0.7):
        # expert_params: dict name -> (W1[H,F], b1[F], W2[F,H], b2[H])
        self.expert_names = list(expert_params.keys())
        self.w1 = jnp.stack([expert_params[n][0] for n in self.expert_names])  # [E,H,F]
        self.b1 = jnp.stack([expert_params[n][1] for n in self.expert_names])  # [E,F]
        self.w2 = jnp.stack([expert_params[n][2] for n in self.expert_names])  # [E,F,H]
        self.b2 = jnp.stack([expert_params[n][3] for n in self.expert_names])  # [E,H]
        self.gamma_values = dict(gamma_values)
        self.previous_gamma_values = dict(previous_gamma_values or gamma_values)
        self.temperature = temperature

    def forward(self, x):
        # x: [B, S, H] float32
        B, S, H = x.shape
        E = len(self.expert_names)

        gamma_vec = jnp.array([self.gamma_values[n] for n in self.expert_names],
                              dtype=jnp.float32)
        prev_vec = jnp.array([self.previous_gamma_values[n] for n in self.expert_names],
                             dtype=jnp.float32)
        gamma_scaled = temperature_scaled_softmax(gamma_vec, self.temperature)

        # ---- Pallas hot path: weighted sum of expert FFN outputs ----
        x2d = x.reshape(B * S, H).astype(jnp.float32)
        weighted_sum = moe_weighted_sum(
            x2d, gamma_scaled, self.w1, self.b1, self.w2, self.b2
        ).reshape(B, S, H)

        # ---- scalar penalty terms (O(E) work, plain JAX) ----
        entropy_reg = entropy_regularization(gamma_scaled)
        kl_penalty = kl_divergence(gamma_scaled, prev_vec)
        uniform = jnp.full((E,), 1.0 / E, dtype=jnp.float32)
        gating_loss = kl_divergence(gamma_scaled, uniform)
        rl_loss = kl_divergence(gamma_scaled, uniform)   # matches reference (same KL twice)

        total_loss = (jnp.mean(weighted_sum)
                      + 0.1 * entropy_reg
                      + 0.01 * kl_penalty
                      + 0.05 * gating_loss
                      + 0.05 * rl_loss)

        # ---- host-side state update ----
        # In the reference all expert_losses equal total_loss.item(); the
        # normalized gamma update is invariant to that common value, so a unit
        # placeholder gives the identical result WITHOUT a blocking device->host
        # sync on the hot path (perf feedback: drop jax.device_get here).
        self.previous_gamma_values = dict(self.gamma_values)
        expert_losses = {n: 1.0 for n in self.expert_names}
        self.gamma_values = update_gamma_values(self.gamma_values, expert_losses)

        return total_loss, weighted_sum, entropy_reg, kl_penalty


# ----------------------------------------------------------------------------
# Main
# ----------------------------------------------------------------------------
if __name__ == "__main__":
    B, S, H, Fd, E = 2, 8, 32, 64, 4

    key = jax.random.PRNGKey(0)
    keys = jax.random.split(key, 1 + 4 * E)
    x = jax.random.normal(keys[0], (B, S, H), dtype=jnp.float32)

    expert_params = {}
    for e in range(E):
        k1, k2, k3, k4 = keys[1 + 4 * e: 1 + 4 * (e + 1)]
        w1 = jax.random.normal(k1, (H, Fd), dtype=jnp.float32) * 0.05
        b1 = jax.random.normal(k2, (Fd,), dtype=jnp.float32) * 0.01
        w2 = jax.random.normal(k3, (Fd, H), dtype=jnp.float32) * 0.05
        b2 = jax.random.normal(k4, (H,), dtype=jnp.float32) * 0.01
        expert_params[f"expert_{e}"] = (w1, b1, w2, b2)

    gamma_values = {f"expert_{e}": 1.0 for e in range(E)}

    router = MoCaERouterWithPenalties(expert_params, gamma_values, temperature=0.7)
    total_loss, weighted_sum, entropy_reg, kl_penalty = router.forward(x)

    jax.block_until_ready((total_loss, weighted_sum, entropy_reg, kl_penalty))
    print("KERNEL_OK")
</pallas_src>

<mosaic_0001>
module attributes {stable_mosaic.version = 11 : i64} {
  func.func @moe_ffn_kernel(%arg0: i32, %arg1: i32, %arg2: memref<4xf32, #tpu.memory_space<smem>>, %arg3: memref<16x128xbf16, #tpu.memory_space<vmem>>, %arg4: memref<1x128x128xbf16, #tpu.memory_space<vmem>>, %arg5: memref<4x1x128xf32, #tpu.memory_space<vmem>>, %arg6: memref<1x128x128xbf16, #tpu.memory_space<vmem>>, %arg7: memref<4x1x128xf32, #tpu.memory_space<vmem>>, %arg8: memref<16x128xf32, #tpu.memory_space<vmem>>) attributes {dimension_semantics = [#tpu.dimension_semantics<parallel>, #tpu.dimension_semantics<arbitrary>], iteration_bounds = array<i64: 1, 4>, scalar_prefetch = 1 : i64, scratch_operands = 0 : i64, tpu.core_type = #tpu.core_type<tc>, window_params = [{transform_indices = @transform_0, window_bounds = array<i64: 16, 128>}, {transform_indices = @transform_1, window_bounds = array<i64: 1, 128, 128>}, {pipeline_mode = #tpu.pipeline_mode<synchronous>, transform_indices = @transform_2, window_bounds = array<i64: 4, 1, 128>}, {transform_indices = @transform_3, window_bounds = array<i64: 1, 128, 128>}, {pipeline_mode = #tpu.pipeline_mode<synchronous>, transform_indices = @transform_4, window_bounds = array<i64: 4, 1, 128>}, {transform_indices = @transform_5, window_bounds = array<i64: 16, 128>}]} {
    %c0_i32 = arith.constant 0 : i32
    %0 = arith.cmpi eq, %arg1, %c0_i32 : i32
    %1 = arith.extui %0 : i1 to i32
    %c0_i32_0 = arith.constant 0 : i32
    %2 = arith.cmpi ne, %1, %c0_i32_0 : i32
    scf.if %2 {
      %cst_18 = arith.constant 0.000000e+00 : f32
      %30 = vector.broadcast %cst_18 : f32 to vector<16x128xf32>
      %c0_19 = arith.constant 0 : index
      %c0_20 = arith.constant 0 : index
      %31 = vector.load %arg8[%c0_19, %c0_20] : memref<16x128xf32, #tpu.memory_space<vmem>>, vector<16x128xf32>
      tpu.vector_store %arg8[%c0_19, %c0_20], %30 {strides = array<i32>} : memref<16x128xf32, #tpu.memory_space<vmem>>, vector<16x128xf32>,
    } else {
    }
    %c0 = arith.constant 0 : index
    %c0_1 = arith.constant 0 : index
    %3 = vector.load %arg3[%c0, %c0_1] : memref<16x128xbf16, #tpu.memory_space<vmem>>, vector<16x128xbf16>
    %c0_2 = arith.constant 0 : index
    %c0_3 = arith.constant 0 : index
    %c0_4 = arith.constant 0 : index
    %4 = vector.load %arg4[%c0_2, %c0_3, %c0_4] : memref<1x128x128xbf16, #tpu.memory_space<vmem>>, vector<1x128x128xbf16>
    %5 = vector.shape_cast %4 : vector<1x128x128xbf16> to vector<128x128xbf16>
    %cst = arith.constant dense<0.000000e+00> : vector<16x128xf32>
    %6 = tpu.matmul %3, %5, %cst {dimension_numbers = #tpu.dot_dimension_numbers<[1], [0], [0], [1], [0, 0, 1, 1], [], []>} : vector<16x128xbf16>, vector<128x128xbf16>, vector<16x128xf32> -> vector<16x128xf32>
    %7 = arith.index_cast %arg1 : i32 to index
    %c0_5 = arith.constant 0 : index
    %c0_6 = arith.constant 0 : index
    %8 = vector.load %arg5[%7, %c0_5, %c0_6] : memref<4x1x128xf32, #tpu.memory_space<vmem>>, vector<1x1x128xf32>
    %9 = vector.shape_cast %8 : vector<1x1x128xf32> to vector<1x128xf32>
    %10 = vector.broadcast %9 : vector<1x128xf32> to vector<16x128xf32>
    %11 = arith.addf %6, %10 : vector<16x128xf32>
    %cst_7 = arith.constant 0.000000e+00 : f32
    %12 = vector.broadcast %cst_7 : f32 to vector<16x128xf32>
    %13 = arith.maximumf %11, %12 : vector<16x128xf32>
    %14 = arith.truncf %13 : vector<16x128xf32> to vector<16x128xbf16>
    %c0_8 = arith.constant 0 : index
    %c0_9 = arith.constant 0 : index
    %c0_10 = arith.constant 0 : index
    %15 = vector.load %arg6[%c0_8, %c0_9, %c0_10] : memref<1x128x128xbf16, #tpu.memory_space<vmem>>, vector<1x128x128xbf16>
    %16 = vector.shape_cast %15 : vector<1x128x128xbf16> to vector<128x128xbf16>
    %cst_11 = arith.constant dense<0.000000e+00> : vector<16x128xf32>
    %17 = tpu.matmul %14, %16, %cst_11 {dimension_numbers = #tpu.dot_dimension_numbers<[1], [0], [0], [1], [0, 0, 1, 1], [], []>} : vector<16x128xbf16>, vector<128x128xbf16>, vector<16x128xf32> -> vector<16x128xf32>
    %18 = arith.index_cast %arg1 : i32 to index
    %c0_12 = arith.constant 0 : index
    %c0_13 = arith.constant 0 : index
    %19 = vector.load %arg7[%18, %c0_12, %c0_13] : memref<4x1x128xf32, #tpu.memory_space<vmem>>, vector<1x1x128xf32>
    %20 = vector.shape_cast %19 : vector<1x1x128xf32> to vector<1x128xf32>
    %21 = vector.broadcast %20 : vector<1x128xf32> to vector<16x128xf32>
    %22 = arith.addf %17, %21 : vector<16x128xf32>
    %c0_14 = arith.constant 0 : index
    %c0_15 = arith.constant 0 : index
    %23 = vector.load %arg8[%c0_14, %c0_15] : memref<16x128xf32, #tpu.memory_space<vmem>>, vector<16x128xf32>
    %24 = arith.index_cast %arg1 : i32 to index
    %25 = memref.load %arg2[%24] : memref<4xf32, #tpu.memory_space<smem>>
    %26 = vector.broadcast %25 : f32 to vector<16x128xf32>
    %27 = arith.mulf %22, %26 : vector<16x128xf32>
    %28 = arith.addf %23, %27 : vector<16x128xf32>
    %c0_16 = arith.constant 0 : index
    %c0_17 = arith.constant 0 : index
    %29 = vector.load %arg8[%c0_16, %c0_17] : memref<16x128xf32, #tpu.memory_space<vmem>>, vector<16x128xf32>
    tpu.vector_store %arg8[%c0_16, %c0_17], %28 {strides = array<i32>} : memref<16x128xf32, #tpu.memory_space<vmem>>, vector<16x128xf32>,
    return
  }
  func.func @transform_0(%arg0: i32, %arg1: i32, %arg2: memref<4xf32, #tpu.memory_space<smem>>) -> (i32, i32) {
    %c0_i32 = arith.constant 0 : i32
    %c0_i32_0 = arith.constant 0 : i32
    return %arg0, %c0_i32 : i32, i32
  }
  func.func @transform_1(%arg0: i32, %arg1: i32, %arg2: memref<4xf32, #tpu.memory_space<smem>>) -> (i32, i32, i32) {
    %c0_i32 = arith.constant 0 : i32
    %c0_i32_0 = arith.constant 0 : i32
    %c0_i32_1 = arith.constant 0 : i32
    return %arg1, %c0_i32, %c0_i32_0 : i32, i32, i32
  }
  func.func @transform_2(%arg0: i32, %arg1: i32, %arg2: memref<4xf32, #tpu.memory_space<smem>>) -> (i32, i32, i32) {
    %c0_i32 = arith.constant 0 : i32
    %c0_i32_0 = arith.constant 0 : i32
    %c0_i32_1 = arith.constant 0 : i32
    %c0_i32_2 = arith.constant 0 : i32
    return %c0_i32, %c0_i32_0, %c0_i32_1 : i32, i32, i32
  }
  func.func @transform_3(%arg0: i32, %arg1: i32, %arg2: memref<4xf32, #tpu.memory_space<smem>>) -> (i32, i32, i32) {
    %c0_i32 = arith.constant 0 : i32
    %c0_i32_0 = arith.constant 0 : i32
    %c0_i32_1 = arith.constant 0 : i32
    return %arg1, %c0_i32, %c0_i32_0 : i32, i32, i32
  }
  func.func @transform_4(%arg0: i32, %arg1: i32, %arg2: memref<4xf32, #tpu.memory_space<smem>>) -> (i32, i32, i32) {
    %c0_i32 = arith.constant 0 : i32
    %c0_i32_0 = arith.constant 0 : i32
    %c0_i32_1 = arith.constant 0 : i32
    %c0_i32_2 = arith.constant 0 : i32
    return %c0_i32, %c0_i32_0, %c0_i32_1 : i32, i32, i32
  }
  func.func @transform_5(%arg0: i32, %arg1: i32, %arg2: memref<4xf32, #tpu.memory_space<smem>>) -> (i32, i32) {
    %c0_i32 = arith.constant 0 : i32
    %c0_i32_0 = arith.constant 0 : i32
    return %arg0, %c0_i32 : i32, i32
  }
}

</mosaic_0001>

<bundles_post_ra>
// kernel: moe_weighted_sum.1
= control target key start
LH: loop header
LB: loop body
LE: loop exit
PB: predicated region body
PF: predicated region fallthrough
CT: control target
= control target key end

     0   :  { %s982_s0 = inlined_call_operand.vmem [shape: f32[4], index: 0, kind: input, shape index: {}]   ;;  %s983_s1 = inlined_call_operand.vmem [shape: bf16[16,128], index: 1, kind: input, shape index: {}]   ;;  %s984_s2 = inlined_call_operand.vmem [shape: bf16[4,128,128], index: 2, kind: input, shape index: {}]   ;;  %s985_s3 = inlined_call_operand.vmem [shape: f32[4,1,128], index: 3, kind: input, shape index: {}]   ;;  %s986_s4 = inlined_call_operand.vmem [shape: bf16[4,128,128], index: 4, kind: input, shape index: {}]   ;;  %s987_s5 = inlined_call_operand.vmem [shape: f32[4,1,128], index: 5, kind: input, shape index: {}]   ;;  %s988_s6 = inlined_call_operand.hbm [shape: f32[16,128], index: 6, kind: output, shape index: {}]  }
   0x1   :  { %s11_s23 = sshll.u32 %s982_s0, 4  ;;  %s12_s23 = int_to_ptr.vmem [resolvable:$true] %s11_s23 }
   0x2   :  { %s770_s24 = scalar_lea.vmem %s12_s23, 16  ;;  %p775_p1 = scmp.lt.s32.totalorder %s12_s23, %s12_s23 }
   0x3   :  { %p771_p0 = scmp.ne.s32.totalorder %s12_s23, %s770_s24  ;;  %p776_p2 = scmp.lt.s32.totalorder %s770_s24, %s770_s24 }
   0x5   :  { %p777_p3 = por %p776_p2, %p775_p1 }
   0x7   :  { %p778_p4 = pnand %p777_p3, %p771_p0 }
   0x9   :  { %781 = shalt.err (!%p778_p4)  }
   0xa   :  { %s838_s25 = smov [#allocation3]  }
   0xb   :  { %14 = dma.vmem_to_smem %s12_s23, 16, %s838_s25, [#allocation2] }
   0xc   :  { %820 = dma.done.wait [#allocation2], 16 }
   0xd   :  { %821 = vsyncadd [#allocation2], 4294967280 }
   0xe   :  { %16 = sfence }
   0xf   :  { %17 = vsyncpa [#allocation5], 0  ;;  %s883_s26 = smov 0   ;;  %s885_s27 = smov 0  }
  0x10   :  { %s887_s28 = smov 0  }
  0x11 LB: > { %s623_s0 = sadd.s32 4294967295, %s836_s28   ;;  %s32_s29 = sadd.s32 1, %s832_s27  ;;  %s836_s28 = sphi %s887_s28, %s23_s28   ;;  %s832_s27 = sphi %s885_s27, %s991_s27   ;;  %s828_s26 = sphi %s883_s26, %s990_s26  }
  0x12   : > { %p33_p5 = scmp.ge.s32.totalorder %s32_s29, 4  ;;  %p627_p6 = scmp.ge.s32.totalorder %s836_s28, 1 }
  0x13   : > { %p228_p7 = scmp.lt.s32.totalorder %s836_s28, 5 }
  0x14   : > { %s993_s29 = smov (%p33_p5, %s32_s29), 0 }
  0x15   : > { %p229_p8 = pnand %p627_p6, %p228_p7 }
  0x16   : > { %p267_p9 = scmp.lt.s32.totalorder (!%p229_p8), %s828_s26, 3  ;;  %p632_p10 = scmp.ne.s32.totalorder (!%p229_p8), %s828_s26, 0 }
  0x17   : > { %232 = sbr.rel (%p229_p8) target bundleno = 527 (0x20f), region = 40 }
  0x1e   : > { %s268_s30 = scalar_select %p267_p9, %s828_s26, 3 }
  0x1f   : > { %282 = sbr.rel (%p632_p10) target bundleno = 38 (0x26), region = 44  ;;  %v839_v0 = vmov (!%p632_p10), 0.0  }
  0x20   : > { %s656_s7 = sshll.u32 %s268_s30, 6  ;;  %283 = vst [vmem:[#allocation4] sm:$0xff] (!%p632_p10), %v839_v0  ;;  %284 = vst [vmem:[#allocation4 + $0x8] sm:$0xff] (!%p632_p10), %v839_v0 }
  0x21   : > { %s909_s10 = scalar_lea.vmem %s984_s2, %s656_s7  ;;  %s914_s13 = scalar_lea.vmem %s986_s4, %s656_s7 }
  0x26 PF: > { %v753_v1 = vld [vmem:[%s909_s10] sm:$0xff]   ;;  %v840_v2 = vmov 0.0   ;;  %v754_v3 = vld [vmem:[%s909_s10 + $0x8] sm:$0xff]   ;;  %vm841_vm0 = vmmov 0   ;;  %v755_v4 = vld [vmem:[%s909_s10 + $0x10] sm:$0xff]   ;;  %s303_s18 = scalar_lea.vmem %s985_s3, %s828_s26  ;;  %s524_s19 = sld [smem:[#allocation3 + %s828_s26]] }
  0x27   : > { %676 = vmatprep.subr.bf16.mxu0 %v840_v2  ;;  %696 = vmatprep.subr.bf16.mxu1 %v840_v2  ;;  %v762_v5 = vld [vmem:[%s914_s13] sm:$0xff]   ;;  %v756_v6 = vld [vmem:[%s909_s10 + $0x18] sm:$0xff]   ;;  %v763_v7 = vld [vmem:[%s914_s13 + $0x8] sm:$0xff]   ;;  %s425_s22 = scalar_lea.vmem %s987_s5, %s828_s26  ;;  %s842_s23 = smov [#allocation4]  }
  0x28   : > { %677 = vmatpush3.bf16.msra.mxu0 %v753_v1  ;;  %692 = vmatprep.mubr.msk.bf16.mxu0 %vm841_vm0, %v840_v2  ;;  %v757_v8 = vld [vmem:[%s909_s10 + $0x20] sm:$0xff]   ;;  %v764_v9 = vld [vmem:[%s914_s13 + $0x10] sm:$0xff]   ;;  %v758_v10 = vld [vmem:[%s909_s10 + $0x28] sm:$0xff]   ;;  %s541_s24 = sshll.u32 %s842_s23, 4  ;;  %p947_p11 = scmp.eq.s32.totalorder %s623_s0, 3  ;;  %s542_s24 = int_to_ptr.vmem [resolvable:$true] %s541_s24 }
  0x29   : > { %678 = vmatprep.subr.bf16.mxu0 %v840_v2  ;;  %712 = vmatprep.mubr.msk.bf16.mxu1 %vm841_vm0, %v840_v2  ;;  %v765_v11 = vld [vmem:[%s914_s13 + $0x18] sm:$0xff]   ;;  %v759_v12 = vld [vmem:[%s909_s10 + $0x30] sm:$0xff]   ;;  %v766_v13 = vld [vmem:[%s914_s13 + $0x20] sm:$0xff]   ;;  %s782_s26 = scalar_lea.vmem %s542_s24, 256  ;;  %p789_p1 = scmp.lt.s32.totalorder %s542_s24, %s542_s24 }
  0x2a   : > { %697 = vmatpush3.bf16.msra.mxu1 %v762_v5  ;;  %v760_v14 = vld [vmem:[%s909_s10 + $0x38] sm:$0xff]   ;;  %v767_v15 = vld [vmem:[%s914_s13 + $0x28] sm:$0xff]   ;;  %v761_v16 = vld [vmem:[%s983_s1] sm:$0xff]   ;;  %p783_p12 = scmp.ne.s32.totalorder %s542_s24, %s782_s26  ;;  %p790_p2 = scmp.lt.s32.totalorder %s782_s26, %s782_s26 }
  0x2b   : > { %698 = vmatprep.subr.bf16.mxu1 %v840_v2  ;;  %v768_v17 = vld [vmem:[%s914_s13 + $0x30] sm:$0xff]   ;;  %v769_v18 = vld [vmem:[%s914_s13 + $0x38] sm:$0xff]   ;;  %v633_v19 = vld [vmem:[%s303_s18] ss:$0 sm:$0xff] }
  0x2c   : > { %679 = vmatpush3.bf16.msra.mxu0 %v754_v3  ;;  %v643_v29 = vld [vmem:[%s425_s22] ss:$0 sm:$0xff]  ;;  %v525_v31 = vstv %s524_s19  ;;  %v523_v39 = vld [vmem:[#allocation4 + $0x8] sm:$0xff]  ;;  %p784_p13 = pnand %p783_p12, %p947_p11  ;;  %p791_p3 = por %p790_p2, %p789_p1 }
  0x2d   : > { %680 = vmatprep.subr.bf16.mxu0 %v840_v2  ;;  %v522_v34 = vld [vmem:[#allocation4] sm:$0xff] }
  0x2e   : > { %699 = vmatpush3.bf16.msra.mxu1 %v763_v7  ;;  %p785_p0 = pneg %p784_p13 }
  0x2f   : > { %700 = vmatprep.subr.bf16.mxu1 %v840_v2 }
  0x30   : > { %681 = vmatpush3.bf16.msra.mxu0 %v755_v4  ;;  %p792_p4 = pnand %p791_p3, %p785_p0 }
  0x31   : > { %682 = vmatprep.subr.bf16.mxu0 %v840_v2 }
  0x32   : > { %701 = vmatpush3.bf16.msra.mxu1 %v764_v9 }
  0x33   : > { %702 = vmatprep.subr.bf16.mxu1 %v840_v2 }
  0x34   : > { %683 = vmatpush3.bf16.msra.mxu0 %v756_v6 }
  0x35   : > { %684 = vmatprep.subr.bf16.mxu0 %v840_v2 }
  0x36   : > { %703 = vmatpush3.bf16.msra.mxu1 %v765_v11 }
  0x37   : > { %704 = vmatprep.subr.bf16.mxu1 %v840_v2 }
  0x38   : > { %685 = vmatpush3.bf16.msra.mxu0 %v757_v8 }
  0x39   : > { %686 = vmatprep.subr.bf16.mxu0 %v840_v2 }
  0x3a   : > { %705 = vmatpush3.bf16.msra.mxu1 %v766_v13 }
  0x3b   : > { %706 = vmatprep.subr.bf16.mxu1 %v840_v2 }
  0x3c   : > { %687 = vmatpush3.bf16.msra.mxu0 %v758_v10 }
  0x3d   : > { %688 = vmatprep.subr.bf16.mxu0 %v840_v2 }
  0x3e   : > { %707 = vmatpush3.bf16.msra.mxu1 %v767_v15 }
  0x3f   : > { %708 = vmatprep.subr.bf16.mxu1 %v840_v2 }
  0x40   : > { %689 = vmatpush3.bf16.msra.mxu0 %v759_v12 }
  0x41   : > { %690 = vmatprep.subr.bf16.mxu0 %v840_v2 }
  0x42   : > { %709 = vmatpush3.bf16.msra.mxu1 %v768_v17 }
  0x43   : > { %710 = vmatprep.subr.bf16.mxu1 %v840_v2 }
  0x44   : > { %691 = vmatpush3.bf16.msra.mxu0 %v760_v14 }
  0x46   : > { %711 = vmatpush3.bf16.msra.mxu1 %v769_v18 }
  0x47   : > { %693 = vmatmul.mubr.bf16.vlgmr.msra.gmra.mrb[0].mxu0 %v761_v16 }
 0x11a   : > { %v399_v20 = vpop.f32.mrb[0].mxu0 }
 0x11b   : > { %v400_v21 = vadd.f32 %v633_v19, %v399_v20  ;;  %v694_v22 = vpop.f32.mrb[1].mxu0 }
 0x11c   : > { %v402_v23 = vpop.f32.mrb[2].mxu0 }
 0x11d   : > { %v403_v24 = vadd.f32 %v633_v19, %v402_v23  ;;  %v695_v25 = vpop.f32.mrb[3].mxu0  ;;  %v406_v26 = vmax.f32 %v400_v21, 0.0 }
 0x11f   : > { %v407_v27 = vmax.f32 %v403_v24, 0.0 }
 0x121   : > { %v408_v28 = vpack.c.bf16 %v407_v27, %v406_v26 }
 0x123   : > { %713 = vmatmul.mubr.bf16.vlgmr.msra.gmra.mrb[0].mxu1 %v408_v28 }
 0x1f6   : > { %v515_v30 = vpop.f32.mrb[0].mxu1 }
 0x1f7   : > { %v516_v32 = vadd.f32 %v643_v29, %v515_v30  ;;  %v714_v33 = vpop.f32.mrb[1].mxu1 }
 0x1f8   : > { %v518_v35 = vpop.f32.mrb[2].mxu1 }
 0x1f9   : > { %v526_v36 = vmul.f32 %v525_v31, %v516_v32  ;;  %v519_v37 = vadd.f32 %v643_v29, %v518_v35  ;;  %v715_v38 = vpop.f32.mrb[3].mxu1 }
 0x1fb   : > { %v528_v40 = vadd.f32 %v526_v36, %v522_v34  ;;  %v527_v41 = vmul.f32 %v525_v31, %v519_v37 }
 0x1fd   : > { %530 = vst [vmem:[#allocation4] sm:$0xff] %v528_v40  ;;  %v529_v42 = vadd.f32 %v527_v41, %v523_v39 }
 0x1ff   : > { %531 = vst [vmem:[#allocation4 + $0x8] sm:$0xff] %v529_v42 }
 0x200   : > { %795 = shalt.err (!%p792_p4)
}
 0x201   : > { %s796_s7 = scalar_lea.hbm %s988_s6, 256 }
 0x202   : > { %p797_p5 = scmp.ne.s32.totalorder %s988_s6, %s796_s7  ;;  %p802_p8 = scmp.lt.u32.totalorder %s796_s7, %s988_s6 }
 0x204   : > { %p798_p6 = pnand %p797_p5, %p947_p11 }
 0x206   : > { %p799_p7 = pneg %p798_p6 }
 0x208   : > { %p804_p9 = pnand %p802_p8, %p799_p7 }
 0x20a   : > { %807 = shalt.err (!%p804_p9)
}
 0x20b   : > { %s843_s12 = smov 128   ;;  %s844_s13 = smov 8  }
 0x20c   : > { %717 = dma.vmem_to_hbm [thread:$0]  (%p947_p11), %s542_s24, 256, %s988_s6, [#allocation5], %s843_s12, %s843_s12, %s844_s13  }
 0x20d   : > { %823 = dma.done.wait (%p947_p11), [#allocation5], 256  }
 0x20e   : > { %825 = vsyncadd (%p947_p11), [#allocation5], 4294967040 }
 0x20f PF: > { %s23_s28 = sadd.s32 1, %s836_s28   ;;  %s990_s26 = smov %s832_s27 }
 0x210   : > { %p20_p10 = scmp.ge.s32.totalorder %s23_s28, 6   ;;  %s991_s27 = smov %s993_s29 }
 0x212   :  { %22 = sbr.rel (!%p20_p10) target bundleno = 17 (0x11), region = 80 }
 0x219   :  { %557 = vsyncpa [#allocation5], 1 }
 0x21a   :  { %559 = vsyncpa [#allocation5 + $0x1], 1 }

</bundles_post_ra>
